<compile_context>
chip_gen: v7x
topology: tpu7x:2x2x1
jax: 0.10.0
libtpu: 0.0.40
codegen_flags: <defaults>
</compile_context>

<pallas_src>
import functools
import numpy as np

import jax
import jax.numpy as jnp
from jax.experimental import pallas as pl
from jax.experimental.pallas import tpu as pltpu


# -----------------------------------------------------------------------------
# In-kernel math helpers (operate on values, not refs)
# -----------------------------------------------------------------------------

_LN_EPS = 1e-5

# f32 erf rational approximation (XLA's f32 erf coefficients) so the fused exact
# GELU matches torch.nn.GELU() numerics closely without relying on an erf
# lowering inside Mosaic.
_ERF_ALPHA = (-2.72614225801306e-10, 2.77068142495902e-08, -2.10102402082508e-06,
              -5.69250639462346e-05, -7.34990630326855e-04, -2.95460005490400e-03,
              -1.60960333262415e-02)
_ERF_BETA = (-1.45660718464996e-05, -2.13374055278905e-04, -1.68282697438203e-03,
             -7.37332916720468e-03, -1.42647390514189e-02)


def _erf_f32(x):
    x = jnp.clip(x, -4.0, 4.0)
    x2 = x * x
    p = _ERF_ALPHA[0]
    for a in _ERF_ALPHA[1:]:
        p = p * x2 + a
    q = _ERF_BETA[0]
    for b in _ERF_BETA[1:]:
        q = q * x2 + b
    return (x * p) / q


def _gelu_exact(x):
    # TODO(synk): a tanh-based GELU would move this work to the EUP slot (v5e
    # VALU relief) at a small numerical deviation from torch's exact-erf GELU.
    return 0.5 * x * (1.0 + _erf_f32(x * np.float32(1.0 / np.sqrt(2.0))))


def _layernorm(x, gamma, beta):
    mean = jnp.mean(x, axis=-1, keepdims=True)
    c = x - mean
    var = jnp.mean(c * c, axis=-1, keepdims=True)
    return c * jax.lax.rsqrt(var + _LN_EPS) * gamma + beta


# -----------------------------------------------------------------------------
# Fused Pallas kernels
# -----------------------------------------------------------------------------

def _patch_embed_kernel(x_ref, w_ref, b_ref, g_ref, bb_ref, o_ref):
    # (patchified pixels) @ W + b  ->  LayerNorm.  Conv2d(k=s=patch) == matmul.
    h = jnp.dot(x_ref[...].astype(jnp.bfloat16), w_ref[...],
                preferred_element_type=jnp.float32) + b_ref[...]
    o_ref[...] = _layernorm(h, g_ref[...], bb_ref[...]).astype(o_ref.dtype)


def _patch_merge_kernel(x_ref, g_ref, b_ref, w_ref, o_ref):
    # LayerNorm(4C) -> Linear(4C, 2C, bias=False), fused.
    h = _layernorm(x_ref[...].astype(jnp.float32), g_ref[...], b_ref[...])
    o_ref[...] = jnp.dot(h.astype(jnp.bfloat16), w_ref[...],
                         preferred_element_type=jnp.float32).astype(o_ref.dtype)


def _swin_block_kernel(*refs, num_heads, has_shift, has_pad):
    """Fused Swin block for one group of G windows (N tokens each, C channels)."""
    it = iter(refs)
    x_ref = next(it)
    shift_ref = next(it) if has_shift else None
    pad_ref = next(it) if has_pad else None
    (bias_ref, n1g_ref, n1b_ref, qkvw_ref, qkvb_ref, projw_ref, projb_ref,
     n2g_ref, n2b_ref, f1w_ref, f1b_ref, f2w_ref, f2b_ref,
     o_ref, qkv_sc, attn_sc) = tuple(it)

    G, N, C = x_ref.shape
    T = G * N
    hd = C // num_heads

    x3 = x_ref[...].astype(jnp.float32)                               # (G, N, C)

    # ---- attention branch -----------------------------------------------------
    h = _layernorm(x3, n1g_ref[...], n1b_ref[...])
    if pad_ref is not None:
        # zero padded tokens post-norm (torchvision pads the normed features).
        h = h * pad_ref[...]
    h2 = h.reshape(T, C).astype(jnp.bfloat16)

    # one wide fused QKV projection (q-scale folded into weights/bias).
    qkv = jnp.dot(h2, qkvw_ref[...], preferred_element_type=jnp.float32) + qkvb_ref[...]
    qkv_sc[...] = qkv.reshape(G, N, 3 * C).astype(jnp.bfloat16)

    for hh in range(num_heads):
        q = qkv_sc[:, :, hh * hd:(hh + 1) * hd]                       # (G, N, hd) bf16
        k = qkv_sc[:, :, C + hh * hd:C + (hh + 1) * hd]
        v = qkv_sc[:, :, 2 * C + hh * hd:2 * C + (hh + 1) * hd]
        s = jnp.einsum('gnd,gmd->gnm', q, k,
                       preferred_element_type=jnp.float32)            # (G, N, N)
        s = s + bias_ref[hh]                                          # rel-pos bias
        if shift_ref is not None:
            s = s + shift_ref[...]                                    # per-window shift mask
        s = s - jnp.max(s, axis=-1, keepdims=True)
        p = jnp.exp(s)
        p = p * pl.reciprocal(jnp.sum(p, axis=-1, keepdims=True), approx=True)
        o_h = jnp.einsum('gnm,gmd->gnd', p.astype(jnp.bfloat16), v,
                         preferred_element_type=jnp.float32)
        attn_sc[:, :, hh * hd:(hh + 1) * hd] = o_h.astype(jnp.bfloat16)

    attn2 = attn_sc[...].reshape(T, C)                                # bf16 lane-dense
    xr = x3.reshape(T, C)
    x2 = xr + (jnp.dot(attn2, projw_ref[...], preferred_element_type=jnp.float32)
               + projb_ref[...])                                      # residual

    # ---- MLP branch -------------------------------------------------------------
    h = _layernorm(x2, n2g_ref[...], n2b_ref[...])
    h = jnp.dot(h.astype(jnp.bfloat16), f1w_ref[...],
                preferred_element_type=jnp.float32) + f1b_ref[...]
    h = _gelu_exact(h)
    h = jnp.dot(h.astype(jnp.bfloat16), f2w_ref[...],
                preferred_element_type=jnp.float32) + f2b_ref[...]
    o_ref[...] = (x2 + h).reshape(G, N, C).astype(o_ref.dtype)


# -----------------------------------------------------------------------------
# pallas_call plumbing
# -----------------------------------------------------------------------------

@functools.lru_cache(maxsize=1)
def _vmem_limit_bytes():
    try:
        cap = int(pltpu.get_tpu_info().vmem_capacity_bytes)
    except Exception:
        cap = 128 * 1024 * 1024
    # 3/4 of physical, clamped: ~48 MiB on v7x (64 MiB VMEM), 64 MiB elsewhere.
    return max(32 * 1024 * 1024, min(3 * cap // 4, 64 * 1024 * 1024))


def _compiler_params():
    return pltpu.CompilerParams(dimension_semantics=("parallel",),
                                vmem_limit_bytes=_vmem_limit_bytes())


@functools.lru_cache(maxsize=1)
def _single_buffer_ok():
    """Probe once whether pipeline_mode=pl.Buffered(1) is supported here."""
    if not hasattr(pl, "Buffered"):
        return False

    def _probe(x_ref, c_ref, o_ref):
        o_ref[...] = x_ref[...] + c_ref[...]

    try:
        const_spec = pl.BlockSpec((8, 128), lambda i: (0, 0),
                                  pipeline_mode=pl.Buffered(1))
        out = pl.pallas_call(
            _probe,
            out_shape=jax.ShapeDtypeStruct((16, 128), jnp.float32),
            grid=(2,),
            in_specs=[pl.BlockSpec((8, 128), lambda i: (i, 0)), const_spec],
            out_specs=pl.BlockSpec((8, 128), lambda i: (i, 0)),
        )(jnp.zeros((16, 128), jnp.float32), jnp.zeros((8, 128), jnp.float32))
        jax.block_until_ready(out)
        return True
    except Exception:
        return False


def _const_spec(shape):
    """BlockSpec for a grid-invariant operand; single-buffered when possible."""
    zeros = (0,) * len(shape)
    index_map = lambda i: zeros
    if _single_buffer_ok():
        return pl.BlockSpec(shape, index_map, pipeline_mode=pl.Buffered(1))
    return pl.BlockSpec(shape, index_map)


def _row_tile(m, cap=512):
    """Largest 8-aligned divisor of m that is <= cap (keeps the DMA pipeline)."""
    best = None
    t = 8
    while t <= min(m, cap):
        if m % t == 0:
            best = t
        t += 8
    return best if best is not None else m


def pallas_patch_embed(x2d, w_bf16, b, gamma, beta):
    M, K = x2d.shape
    N = w_bf16.shape[1]
    tm = _row_tile(M)
    return pl.pallas_call(
        _patch_embed_kernel,
        out_shape=jax.ShapeDtypeStruct((M, N), x2d.dtype),
        grid=(M // tm,),
        in_specs=[pl.BlockSpec((tm, K), lambda i: (i, 0)),
                  _const_spec((K, N)), _const_spec((1, N)),
                  _const_spec((1, N)), _const_spec((1, N))],
        out_specs=pl.BlockSpec((tm, N), lambda i: (i, 0)),
        compiler_params=_compiler_params(),
    )(x2d, w_bf16, b.reshape(1, N), gamma.reshape(1, N), beta.reshape(1, N))


def pallas_patch_merge(x2d, gamma, beta, w_bf16):
    M, K = x2d.shape
    N = w_bf16.shape[1]
    tm = _row_tile(M)
    return pl.pallas_call(
        _patch_merge_kernel,
        out_shape=jax.ShapeDtypeStruct((M, N), x2d.dtype),
        grid=(M // tm,),
        in_specs=[pl.BlockSpec((tm, K), lambda i: (i, 0)),
                  _const_spec((1, K)), _const_spec((1, K)), _const_spec((K, N))],
        out_specs=pl.BlockSpec((tm, N), lambda i: (i, 0)),
        compiler_params=_compiler_params(),
    )(x2d, gamma.reshape(1, K), beta.reshape(1, K), w_bf16)


def pallas_swin_block(xw, blk):
    """xw: (B*nW, N, C) tokens in window layout."""
    BW, N, C = xw.shape
    nh = blk["num_heads"]
    G = blk["group"]                 # windows per grid step (divides nW)
    nwg = blk["nW"] // G             # window-groups per image
    grid = BW // G
    has_shift = blk["shift_mask"] is not None
    has_pad = blk["pad_mask"] is not None
    row = lambda a: a.reshape(1, -1)

    inputs = [xw]
    in_specs = [pl.BlockSpec((G, N, C), lambda i: (i, 0, 0))]
    if has_shift:
        inputs.append(blk["shift_mask"])                       # (nW, N, N)
        in_specs.append(pl.BlockSpec((G, N, N), lambda i: (i % nwg, 0, 0)))
    if has_pad:
        inputs.append(blk["pad_mask"])                         # (nW, N, 1)
        in_specs.append(pl.BlockSpec((G, N, 1), lambda i: (i % nwg, 0, 0)))
    consts = [blk["rel_bias"],
              row(blk["norm1_g"]), row(blk["norm1_b"]),
              blk["qkv_w_s"], blk["qkv_b_s"],
              blk["proj_w_bf16"], row(blk["proj_b"]),
              row(blk["norm2_g"]), row(blk["norm2_b"]),
              blk["fc1_w_bf16"], row(blk["fc1_b"]),
              blk["fc2_w_bf16"], row(blk["fc2_b"])]
    inputs += consts
    in_specs += [_const_spec(tuple(c.shape)) for c in consts]

    kernel = functools.partial(_swin_block_kernel, num_heads=nh,
                               has_shift=has_shift, has_pad=has_pad)
    return pl.pallas_call(
        kernel,
        out_shape=jax.ShapeDtypeStruct((BW, N, C), xw.dtype),
        grid=(grid,),
        in_specs=in_specs,
        out_specs=pl.BlockSpec((G, N, C), lambda i: (i, 0, 0)),
        scratch_shapes=[pltpu.VMEM((G, N, 3 * C), jnp.bfloat16),   # fused qkv staging
                        pltpu.VMEM((G, N, C), jnp.bfloat16)],      # head-merge staging
        compiler_params=_compiler_params(),
    )(*inputs)


# -----------------------------------------------------------------------------
# Precomputed per-block constants (hoisted out of the per-forward path)
# -----------------------------------------------------------------------------

@functools.lru_cache(maxsize=None)
def _relative_position_index(ws):
    coords = np.stack(np.meshgrid(np.arange(ws[0]), np.arange(ws[1]), indexing="ij"))
    coords_flat = coords.reshape(2, -1)
    rel = coords_flat[:, :, None] - coords_flat[:, None, :]
    rel = rel.transpose(1, 2, 0).astype(np.int64)
    rel[:, :, 0] += ws[0] - 1
    rel[:, :, 1] += ws[1] - 1
    rel[:, :, 0] *= 2 * ws[1] - 1
    return rel.sum(-1)                                              # (N, N)


def _relative_position_bias(table, ws, num_heads):
    N = ws[0] * ws[1]
    idx = jnp.asarray(_relative_position_index(tuple(ws)).reshape(-1))
    bias = table[idx].reshape(N, N, num_heads)
    return jnp.transpose(bias, (2, 0, 1)).astype(jnp.float32)       # (nh, N, N)


def _shift_attn_mask(pad_H, pad_W, ws, shift):
    mask = np.zeros((pad_H, pad_W), dtype=np.float32)
    h_slices = ((0, -ws[0]), (-ws[0], -shift[0]), (-shift[0], None))
    w_slices = ((0, -ws[1]), (-ws[1], -shift[1]), (-shift[1], None))
    cnt = 0
    for hs in h_slices:
        for wsl in w_slices:
            mask[hs[0]:hs[1], wsl[0]:wsl[1]] = cnt
            cnt += 1
    nwh, nww = pad_H // ws[0], pad_W // ws[1]
    N = ws[0] * ws[1]
    mask = mask.reshape(nwh, ws[0], nww, ws[1]).transpose(0, 2, 1, 3).reshape(nwh * nww, N)
    diff = mask[:, None, :] - mask[:, :, None]
    return np.where(diff != 0, -100.0, 0.0).astype(np.float32)      # (nW, N, N)


def _build_pad_mask(H, W, pad_H, pad_W, ws, shift):
    valid = np.zeros((pad_H, pad_W), np.float32)
    valid[:H, :W] = 1.0
    if sum(shift) > 0:
        valid = np.roll(valid, (-shift[0], -shift[1]), axis=(0, 1))
    nwh, nww = pad_H // ws[0], pad_W // ws[1]
    valid = valid.reshape(nwh, ws[0], nww, ws[1]).transpose(0, 2, 1, 3)
    return jnp.asarray(valid.reshape(nwh * nww, ws[0] * ws[1], 1))  # (nW, N, 1)


def _geometry(H, W, ws, shift):
    pad_H = H + (ws[0] - H % ws[0]) % ws[0]
    pad_W = W + (ws[1] - W % ws[1]) % ws[1]
    shift = list(shift)
    if ws[0] >= pad_H:
        shift[0] = 0
    if ws[1] >= pad_W:
        shift[1] = 0
    return pad_H, pad_W, shift


def _pick_group(nW, N, target_rows=512):
    """Largest window-group size G dividing nW with G*N <= target_rows."""
    best = 1
    for g in range(1, nW + 1):
        if nW % g == 0 and g * N <= target_rows:
            best = g
    return best


def prepare_constants(params, image_hw, patch_size, window_size):
    """Precompute biases/masks, window grouping, and bf16 / q-scaled weight slabs."""
    H = image_hw[0] // patch_size[0]
    W = image_hw[1] // patch_size[1]
    ws = tuple(window_size)
    N = ws[0] * ws[1]

    pe = params["patch_embed"]
    pe["conv_w_bf16"] = pe["conv_w"].astype(jnp.bfloat16)

    for stage in params["stages"]:
        for blk in stage["blocks"]:
            nh = blk["num_heads"]
            C = blk["proj_w"].shape[0]
            hd = C // nh
            pad_H, pad_W, shift = _geometry(H, W, ws, blk["shift"])
            nW = (pad_H // ws[0]) * (pad_W // ws[1])
            blk["eff_shift"] = shift
            blk["nW"] = nW
            blk["group"] = _pick_group(nW, N)
            blk["rel_bias"] = _relative_position_bias(blk["rel_bias_table"], ws, nh)
            blk["shift_mask"] = (jnp.asarray(_shift_attn_mask(pad_H, pad_W, ws, shift))
                                 if sum(shift) > 0 else None)
            blk["pad_mask"] = (_build_pad_mask(H, W, pad_H, pad_W, ws, shift)
                               if (pad_H != H or pad_W != W) else None)
            # fused (C, 3C) qkv weight with the 1/sqrt(hd) scale folded into q.
            scale = np.float32(hd ** -0.5)
            qkv_w = blk["qkv_w"].at[:, :C].multiply(scale)
            qkv_b = blk["qkv_b"].at[:C].multiply(scale)
            blk["qkv_w_s"] = qkv_w.astype(jnp.bfloat16)
            blk["qkv_b_s"] = qkv_b.reshape(1, 3 * C)
            blk["proj_w_bf16"] = blk["proj_w"].astype(jnp.bfloat16)
            blk["fc1_w_bf16"] = blk["fc1_w"].astype(jnp.bfloat16)
            blk["fc2_w_bf16"] = blk["fc2_w"].astype(jnp.bfloat16)
        if "merge" in stage:
            stage["merge"]["red_w_bf16"] = stage["merge"]["red_w"].astype(jnp.bfloat16)
            H = (H + 1) // 2
            W = (W + 1) // 2
    return params


# -----------------------------------------------------------------------------
# Forward pass (layout glue in plain JAX, all math inside fused Pallas kernels)
# -----------------------------------------------------------------------------

def _partition_windows(x, ws, shift):
    B, H, W, C = x.shape
    pad_H = H + (ws[0] - H % ws[0]) % ws[0]
    pad_W = W + (ws[1] - W % ws[1]) % ws[1]
    if pad_H != H or pad_W != W:
        x = jnp.pad(x, ((0, 0), (0, pad_H - H), (0, pad_W - W), (0, 0)))
    if sum(shift) > 0:
        x = jnp.roll(x, shift=(-shift[0], -shift[1]), axis=(1, 2))
    nwh, nww = pad_H // ws[0], pad_W // ws[1]
    xw = x.reshape(B, nwh, ws[0], nww, ws[1], C).transpose(0, 1, 3, 2, 4, 5)
    return xw.reshape(B * nwh * nww, ws[0] * ws[1], C), (pad_H, pad_W, nwh, nww)


def _reverse_windows(xw, B, H, W, C, ws, shift, meta):
    pad_H, pad_W, nwh, nww = meta
    x = xw.reshape(B, nwh, nww, ws[0], ws[1], C).transpose(0, 1, 3, 2, 4, 5)
    x = x.reshape(B, pad_H, pad_W, C)
    if sum(shift) > 0:
        x = jnp.roll(x, shift=(shift[0], shift[1]), axis=(1, 2))
    return x[:, :H, :W, :]


def swin_block_forward(x, blk, window_size):
    # TODO(synk): the reverse(block i) + partition(block i+1) layout glue could be
    # composed into one XLA transpose chain to halve the inter-block HBM traffic.
    B, H, W, C = x.shape
    ws = tuple(window_size)
    shift = blk["eff_shift"]
    xw, meta = _partition_windows(x, ws, shift)
    out = pallas_swin_block(xw, blk)
    return _reverse_windows(out, B, H, W, C, ws, shift, meta)


def patch_merging_forward(x, p):
    B, H, W, C = x.shape
    if (H % 2) or (W % 2):
        x = jnp.pad(x, ((0, 0), (0, H % 2), (0, W % 2), (0, 0)))
    H2, W2 = x.shape[1] // 2, x.shape[2] // 2
    # 2x2 neighborhood gather; channel order matches torchvision ([x0, x1, x2, x3]).
    xc = x.reshape(B, H2, 2, W2, 2, C).transpose(0, 1, 3, 4, 2, 5).reshape(B * H2 * W2, 4 * C)
    out = pallas_patch_merge(xc, p["norm_g"], p["norm_b"], p["red_w_bf16"])
    return out.reshape(B, H2, W2, 2 * C)


def swin_backbone_forward(x, params, patch_size, embed_dim, window_size):
    """x: (B, 3, H, W) float32 (NCHW). Returns the per-stage skip list."""
    pe = params["patch_embed"]
    B, Cin, H, W = x.shape
    p0, p1 = patch_size
    Hp, Wp = H // p0, W // p1
    # Conv2d(kernel=stride=patch) == patchify + matmul (patch flattened (cin, kh, kw)).
    xp = x.reshape(B, Cin, Hp, p0, Wp, p1).transpose(0, 2, 4, 1, 3, 5)
    xp = xp.reshape(B * Hp * Wp, Cin * p0 * p1)
    h = pallas_patch_embed(xp, pe["conv_w_bf16"], pe["conv_b"], pe["norm_g"], pe["norm_b"])
    h = h.reshape(B, Hp, Wp, embed_dim)

    skips = []
    for stage in params["stages"]:
        for blk in stage["blocks"]:
            h = swin_block_forward(h, blk, window_size)
        if "merge" in stage:
            h = patch_merging_forward(h, stage["merge"])
        skips.append(h)
    # note: self.norm exists on the module but is not applied in forward().
    return skips


# -----------------------------------------------------------------------------
# Deterministic parameter initialization (synthetic; mirrors module __init__ shapes)
# -----------------------------------------------------------------------------

def init_params(key, patch_size, embed_dim, depths, num_heads, window_size, mlp_ratio=4.0):
    keys = iter(jax.random.split(key, 256))

    def nrm(shape, std=0.02):
        return (jax.random.normal(next(keys), shape, jnp.float32) * std).astype(jnp.float32)

    def zeros(*shape):
        return jnp.zeros(shape, jnp.float32)

    def ones(*shape):
        return jnp.ones(shape, jnp.float32)

    params = {
        "patch_embed": {
            "conv_w": nrm((3 * patch_size[0] * patch_size[1], embed_dim)),
            "conv_b": zeros(embed_dim),
            "norm_g": ones(embed_dim),
            "norm_b": zeros(embed_dim),
        },
        "stages": [],
    }
    ws0, ws1 = window_size
    for i_stage in range(len(depths)):
        dim = embed_dim * (2 ** i_stage)
        nh = num_heads[i_stage]
        hidden = int(dim * mlp_ratio)
        blocks = []
        for i_layer in range(depths[i_stage]):
            shift = [0 if i_layer % 2 == 0 else w // 2 for w in window_size]
            blocks.append({
                "shift": shift,
                "num_heads": nh,
                "norm1_g": ones(dim), "norm1_b": zeros(dim),
                "qkv_w": nrm((dim, 3 * dim)), "qkv_b": zeros(3 * dim),
                "proj_w": nrm((dim, dim)), "proj_b": zeros(dim),
                "rel_bias_table": nrm(((2 * ws0 - 1) * (2 * ws1 - 1), nh)),
                "norm2_g": ones(dim), "norm2_b": zeros(dim),
                "fc1_w": nrm((dim, hidden)), "fc1_b": zeros(hidden),
                "fc2_w": nrm((hidden, dim)), "fc2_b": zeros(dim),
            })
        stage = {"blocks": blocks}
        if i_stage < len(depths) - 1:
            stage["merge"] = {
                "norm_g": ones(4 * dim), "norm_b": zeros(4 * dim),
                "red_w": nrm((4 * dim, 2 * dim)),
            }
        params["stages"].append(stage)
    return params


# -----------------------------------------------------------------------------
# Main
# -----------------------------------------------------------------------------

if __name__ == "__main__":
    patch_size = [4, 4]
    embed_dim = 32
    depths = [2, 2]
    num_heads = [2, 4]
    window_size = [4, 4]

    key = jax.random.PRNGKey(0)
    pkey, xkey = jax.random.split(key)
    params = init_params(pkey, patch_size, embed_dim, depths, num_heads, window_size)

    # Small NCHW input consistent with Conv2d(3, embed_dim, kernel=stride=patch_size).
    x = jax.random.normal(xkey, (2, 3, 32, 32), jnp.float32)

    # hoist bias/mask construction, window grouping and weight re-arrangement
    # out of the forward path.
    params = prepare_constants(params, (32, 32), patch_size, window_size)

    skips = swin_backbone_forward(x, params, patch_size, embed_dim, window_size)
    skips = [jax.block_until_ready(s) for s in skips]

    # sanity: stage0 output (after PatchMerging) (2,4,4,64); stage1 output (2,4,4,64)
    assert skips[0].shape == (2, 4, 4, 64)
    assert skips[1].shape == (2, 4, 4, 64)
    assert all(bool(jnp.all(jnp.isfinite(s))) for s in skips)

    print("KERNEL_OK")
</pallas_src>

<mosaic_0001>
module attributes {stable_mosaic.version = 11 : i64} {
  func.func @_probe(%arg0: i32, %arg1: memref<8x128xf32, #tpu.memory_space<vmem>>, %arg2: memref<8x128xf32, #tpu.memory_space<vmem>>, %arg3: memref<8x128xf32, #tpu.memory_space<vmem>>) attributes {dimension_semantics = [#tpu.dimension_semantics<arbitrary>], iteration_bounds = array<i64: 2>, scalar_prefetch = 0 : i64, scratch_operands = 0 : i64, tpu.core_type = #tpu.core_type<tc>, window_params = [{transform_indices = @transform_0, window_bounds = array<i64: 8, 128>}, {pipeline_mode = #tpu.pipeline_mode<synchronous>, transform_indices = @transform_1, window_bounds = array<i64: 8, 128>}, {transform_indices = @transform_2, window_bounds = array<i64: 8, 128>}]} {
    %c0 = arith.constant 0 : index
    %c0_0 = arith.constant 0 : index
    %0 = vector.load %arg1[%c0, %c0_0] : memref<8x128xf32, #tpu.memory_space<vmem>>, vector<8x128xf32>
    %c0_1 = arith.constant 0 : index
    %c0_2 = arith.constant 0 : index
    %1 = vector.load %arg2[%c0_1, %c0_2] : memref<8x128xf32, #tpu.memory_space<vmem>>, vector<8x128xf32>
    %2 = arith.addf %0, %1 : vector<8x128xf32>
    %c0_3 = arith.constant 0 : index
    %c0_4 = arith.constant 0 : index
    %3 = vector.load %arg3[%c0_3, %c0_4] : memref<8x128xf32, #tpu.memory_space<vmem>>, vector<8x128xf32>
    tpu.vector_store %arg3[%c0_3, %c0_4], %2 {strides = array<i32>} : memref<8x128xf32, #tpu.memory_space<vmem>>, vector<8x128xf32>,
    return
  }
  func.func @transform_0(%arg0: i32) -> (i32, i32) {
    %c0_i32 = arith.constant 0 : i32
    %c0_i32_0 = arith.constant 0 : i32
    return %arg0, %c0_i32 : i32, i32
  }
  func.func @transform_1(%arg0: i32) -> (i32, i32) {
    %c0_i32 = arith.constant 0 : i32
    %c0_i32_0 = arith.constant 0 : i32
    %c0_i32_1 = arith.constant 0 : i32
    return %c0_i32, %c0_i32_0 : i32, i32
  }
  func.func @transform_2(%arg0: i32) -> (i32, i32) {
    %c0_i32 = arith.constant 0 : i32
    %c0_i32_0 = arith.constant 0 : i32
    return %arg0, %c0_i32 : i32, i32
  }
}

module attributes {stable_mosaic.version = 11 : i64} {
  func.func @_patch_embed_kernel(%arg0: i32, %arg1: memref<128x48xf32, #tpu.memory_space<vmem>>, %arg2: memref<48x32xbf16, #tpu.memory_space<vmem>>, %arg3: memref<1x32xf32, #tpu.memory_space<vmem>>, %arg4: memref<1x32xf32, #tpu.memory_space<vmem>>, %arg5: memref<1x32xf32, #tpu.memory_space<vmem>>, %arg6: memref<128x32xf32, #tpu.memory_space<vmem>>) attributes {dimension_semantics = [#tpu.dimension_semantics<parallel>], iteration_bounds = array<i64: 1>, scalar_prefetch = 0 : i64, scratch_operands = 0 : i64, tpu.core_type = #tpu.core_type<tc>, window_params = [{transform_indices = @transform_0, window_bounds = array<i64: 128, 48>}, {pipeline_mode = #tpu.pipeline_mode<synchronous>, transform_indices = @transform_1, window_bounds = array<i64: 48, 32>}, {pipeline_mode = #tpu.pipeline_mode<synchronous>, transform_indices = @transform_2, window_bounds = array<i64: 1, 32>}, {pipeline_mode = #tpu.pipeline_mode<synchronous>, transform_indices = @transform_3, window_bounds = array<i64: 1, 32>}, {pipeline_mode = #tpu.pipeline_mode<synchronous>, transform_indices = @transform_4, window_bounds = array<i64: 1, 32>}, {transform_indices = @transform_5, window_bounds = array<i64: 128, 32>}]} {
    %c0 = arith.constant 0 : index
    %c0_0 = arith.constant 0 : index
    %0 = vector.load %arg1[%c0, %c0_0] : memref<128x48xf32, #tpu.memory_space<vmem>>, vector<128x48xf32>
    %1 = arith.truncf %0 : vector<128x48xf32> to vector<128x48xbf16>
    %c0_1 = arith.constant 0 : index
    %c0_2 = arith.constant 0 : index
    %2 = vector.load %arg2[%c0_1, %c0_2] : memref<48x32xbf16, #tpu.memory_space<vmem>>, vector<48x32xbf16>
    %cst = arith.constant dense<0.000000e+00> : vector<128x32xf32>
    %3 = tpu.matmul %1, %2, %cst {dimension_numbers = #tpu.dot_dimension_numbers<[1], [0], [0], [1], [0, 0, 1, 1], [], []>} : vector<128x48xbf16>, vector<48x32xbf16>, vector<128x32xf32> -> vector<128x32xf32>
    %c0_3 = arith.constant 0 : index
    %c0_4 = arith.constant 0 : index
    %4 = vector.load %arg3[%c0_3, %c0_4] : memref<1x32xf32, #tpu.memory_space<vmem>>, vector<1x32xf32>
    %5 = vector.broadcast %4 : vector<1x32xf32> to vector<128x32xf32>
    %6 = arith.addf %3, %5 : vector<128x32xf32>
    %c0_5 = arith.constant 0 : index
    %c0_6 = arith.constant 0 : index
    %7 = vector.load %arg4[%c0_5, %c0_6] : memref<1x32xf32, #tpu.memory_space<vmem>>, vector<1x32xf32>
    %c0_7 = arith.constant 0 : index
    %c0_8 = arith.constant 0 : index
    %8 = vector.load %arg5[%c0_7, %c0_8] : memref<1x32xf32, #tpu.memory_space<vmem>>, vector<1x32xf32>
    %cst_9 = arith.constant dense<0.000000e+00> : vector<128xf32>
    %9 = vector.multi_reduction <add>, %6, %cst_9 [1] : vector<128x32xf32> to vector<128xf32>
    %10 = vector.shape_cast %9 : vector<128xf32> to vector<128x1xf32>
    %cst_10 = arith.constant 3.200000e+01 : f32
    %11 = vector.broadcast %cst_10 : f32 to vector<128x1xf32>
    %12 = arith.divf %10, %11 : vector<128x1xf32>
    %13 = vector.broadcast %12 : vector<128x1xf32> to vector<128x32xf32>
    %14 = arith.subf %6, %13 : vector<128x32xf32>
    %15 = arith.mulf %14, %14 : vector<128x32xf32>
    %cst_11 = arith.constant dense<0.000000e+00> : vector<128xf32>
    %16 = vector.multi_reduction <add>, %15, %cst_11 [1] : vector<128x32xf32> to vector<128xf32>
    %17 = vector.shape_cast %16 : vector<128xf32> to vector<128x1xf32>
    %cst_12 = arith.constant 3.200000e+01 : f32
    %18 = vector.broadcast %cst_12 : f32 to vector<128x1xf32>
    %19 = arith.divf %17, %18 : vector<128x1xf32>
    %cst_13 = arith.constant 9.99999974E-6 : f32
    %20 = vector.broadcast %cst_13 : f32 to vector<128x1xf32>
    %21 = arith.addf %19, %20 : vector<128x1xf32>
    %22 = math.rsqrt %21 : vector<128x1xf32>
    %23 = vector.broadcast %22 : vector<128x1xf32> to vector<128x32xf32>
    %24 = arith.mulf %14, %23 : vector<128x32xf32>
    %25 = vector.broadcast %7 : vector<1x32xf32> to vector<128x32xf32>
    %26 = arith.mulf %24, %25 : vector<128x32xf32>
    %27 = vector.broadcast %8 : vector<1x32xf32> to vector<128x32xf32>
    %28 = arith.addf %26, %27 : vector<128x32xf32>
    %c0_14 = arith.constant 0 : index
    %c0_15 = arith.constant 0 : index
    %29 = vector.load %arg6[%c0_14, %c0_15] : memref<128x32xf32, #tpu.memory_space<vmem>>, vector<128x32xf32>
    tpu.vector_store %arg6[%c0_14, %c0_15], %28 {strides = array<i32>} : memref<128x32xf32, #tpu.memory_space<vmem>>, vector<128x32xf32>,
    return
  }
  func.func @transform_0(%arg0: i32) -> (i32, i32) {
    %c0_i32 = arith.constant 0 : i32
    %c0_i32_0 = arith.constant 0 : i32
    return %arg0, %c0_i32 : i32, i32
  }
  func.func @transform_1(%arg0: i32) -> (i32, i32) {
    %c0_i32 = arith.constant 0 : i32
    %c0_i32_0 = arith.constant 0 : i32
    %c0_i32_1 = arith.constant 0 : i32
    return %c0_i32, %c0_i32_0 : i32, i32
  }
  func.func @transform_2(%arg0: i32) -> (i32, i32) {
    %c0_i32 = arith.constant 0 : i32
    %c0_i32_0 = arith.constant 0 : i32
    %c0_i32_1 = arith.constant 0 : i32
    return %c0_i32, %c0_i32_0 : i32, i32
  }
  func.func @transform_3(%arg0: i32) -> (i32, i32) {
    %c0_i32 = arith.constant 0 : i32
    %c0_i32_0 = arith.constant 0 : i32
    %c0_i32_1 = arith.constant 0 : i32
    return %c0_i32, %c0_i32_0 : i32, i32
  }
  func.func @transform_4(%arg0: i32) -> (i32, i32) {
    %c0_i32 = arith.constant 0 : i32
    %c0_i32_0 = arith.constant 0 : i32
    %c0_i32_1 = arith.constant 0 : i32
    return %c0_i32, %c0_i32_0 : i32, i32
  }
  func.func @transform_5(%arg0: i32) -> (i32, i32) {
    %c0_i32 = arith.constant 0 : i32
    %c0_i32_0 = arith.constant 0 : i32
    return %arg0, %c0_i32 : i32, i32
  }
}

</mosaic_0001>

<bundles_post_ra>
// kernel: tpu_custom_call.1
= control target key start
LH: loop header
LB: loop body
LE: loop exit
PB: predicated region body
PF: predicated region fallthrough
CT: control target
= control target key end

     0   :  { %7 = vsyncpa [#allocation3], 0  ;;  %s690_s0 = inlined_call_operand.hbm [shape: f32[16,128], index: 0, kind: input, shape index: {}]   ;;  %s691_s1 = inlined_call_operand.hbm [shape: f32[8,128], index: 1, kind: input, shape index: {}]   ;;  %s692_s2 = inlined_call_operand.hbm [shape: f32[16,128], index: 2, kind: output, shape index: {}]  }
   0x1   :  { %9 = vsyncpa [#allocation3 + $0x1], 0 }
   0x2   :  { %10 = vsyncpa [#allocation6], 0 }
   0x3   :  { %11 = vsyncpa [#allocation4], 0 }
   0x4   :  { %13 = vsyncpa [#allocation4 + $0x1], 0  ;;  %s489_s9 = smov 0   ;;  %s491_s10 = smov 0  }
   0x5   :  { %s493_s11 = smov 0   ;;  %s495_s12 = smov 0  }
   0x6 LB: > { %s510_s13 = sadd.s32 4294967295, %s469_s12   ;;  %s270_s14 = sadd.s32 4294967294, %s469_s12   ;;  %s469_s12 = sphi %s495_s12, %s716_s12   ;;  %s465_s11 = sphi %s493_s11, %s715_s11   ;;  %s461_s10 = sphi %s491_s10, %s714_s10   ;;  %s457_s9 = sphi %s489_s9, %s713_s9  }
   0x7   : > { %p39_p0 = scmp.ne.s32.totalorder %s461_s10, %s457_s9  ;;  %p693_p1 = scmp.eq.s32.totalorder %s510_s13, 0 }
   0x8   : > { %p90_p3 = scmp.eq.s32.totalorder %s270_s14, 1  ;;  %p271_p5 = scmp.ge.s32.totalorder %s469_s12, 1 }
   0x9   : > { %p519_p4 = por %p693_p1, %p39_p0  ;;  %p97_p7 = scmp.lt.s32.totalorder %s469_s12, 3 }
   0xa   : > { %p524_p6 = por %p90_p3, %p39_p0  ;;  %s471_s18 = smov [#allocation5]  }
   0xb   : > { %s696_s15 = scalar_select %p519_p4, 1, 0 }
   0xc   : > { %s697_s16 = scalar_select %p524_p6, 1, 0 }
   0xd   : > { %p529_p8 = pnand %p271_p5, %p97_p7  ;;  %s110_s19 = sshll.u32 %s471_s18, 4  ;;  %s111_s19 = int_to_ptr.vmem [resolvable:$true] %s110_s19 }
   0xe   : > { %s537_s20 = sadd.s32 1, %s469_s12   ;;  %s26_s24 = sadd.s32 1, %s465_s11 }
   0xf   : > { %s698_s17 = scalar_select %p529_p8, 1, 0 }
  0x10   : > { %p292_p10 = pneg %p529_p8  ;;  %s23_s22 = ssub.s32 %s469_s12, %s537_s20 }
  0x11   : > { %p547_p12 = scmp.eq.s32.totalorder %s23_s22, 0  ;;  %s341_s27 = scalar_lea.hbm %s691_s1, 128 }
  0x12   : > { %p541_p11 = pnand %p292_p10, %p693_p1  ;;  %p342_p0 = scmp.ne.s32.totalorder %s691_s1, %s341_s27 }
  0x13   : > { %s700_s23 = scalar_select %p547_p12, 1, 0 }
  0x14   : > { %p343_p3 = pneg %p541_p11  ;;  %p348_p10 = scmp.lt.u32.totalorder %s341_s27, %s691_s1 }
  0x16   : > { %p344_p5 = pnand %p343_p3, %p342_p0 }
  0x18   : > { %p345_p7 = pneg %p344_p5 }
  0x1a   : > { %p350_p9 = pnand %p348_p10, %p345_p7 }
  0x1c   : > { %353 = shalt.err (!%p350_p9)
}
  0x1d   : > { %s354_s4 = scalar_lea.vmem %s111_s19, 128  ;;  %p362_p6 = scmp.lt.s32.totalorder %s111_s19, %s111_s19 }
  0x1e   : > { %p355_p1 = scmp.ne.s32.totalorder %s111_s19, %s354_s4  ;;  %p363_p4 = scmp.lt.s32.totalorder %s354_s4, %s354_s4 }
  0x20   : > { %p357_p2 = pnand %p355_p1, %p343_p3  ;;  %p364_p8 = por %p363_p4, %p362_p6 }
  0x22   : > { %p358_p13 = pneg %p357_p2 }
  0x24   : > { %p365_p12 = pnand %p364_p8, %p358_p13 }
  0x26   : > { %368 = shalt.err (!%p365_p12)
}
  0x27   : > { %295 = dma.hbm_to_vmem [thread:$0]  (!%p541_p11), %s691_s1, 128, %s111_s19, [#allocation6]  }
  0x28   : > { %p701_p1 = scmp.ne.s32.totalorder %s700_s23, 0  ;;  %p34_p2 = scmp.eq.s32.totalorder %s469_s12, 0 }
  0x29   : > { %p702_p4 = scmp.ne.s32.totalorder %s465_s11, %s461_s10  ;;  %p703_p6 = scmp.eq.s32.totalorder %s510_s13, 1 }
  0x2a   : > { %s573_s7 = scalar_select %p701_p1, %s465_s11, %s26_s24  }
  0x2b   : > { %p581_p8 = por %p703_p6, %p702_p4  ;;  %p305_p9 = scmp.lt.s32.totalorder %s469_s12, 2 }
  0x2c   : > { %s121_s14 = sand.u32 1, %s465_s11   ;;  %p705_p12 = pmov %p702_p4 }
  0x2d   : > { %s274_s18 = sshll.u32 %s121_s14, 3  ;;  %s275_s21 = sshll.u32 %s469_s12, 7 }
  0x2e   : > { %p35_p13 = por %p34_p2, %p705_p12  ;;  %s594_s19 = scalar_lea.hbm %s690_s0, %s275_s21 }
  0x2f   : > { %s125_s23 = scalar_lea.vmem [#allocation2], %s274_s18  ;;  %s122_s27 = scalar_lea.sflag [#allocation3], %s121_s14 }
  0x30   : > { %s132_s24 = sshll.u32 %s125_s23, 4  ;;  %p596_p11 = pnand %p305_p9, %p35_p13  ;;  %s600_s24 = int_to_ptr.vmem [resolvable:$true] %s132_s24 }
  0x31   : > { %s369_s28 = scalar_lea.hbm %s594_s19, 128  ;;  %s374_s3 = scalar_lea.hbm %s690_s0, 256 }
  0x32   : > { %p370_p0 = scmp.ne.s32.totalorder %s594_s19, %s369_s28  ;;  %p371_p3 = pneg %p596_p11 }
  0x33   : > { %p375_p10 = scmp.lt.u32.totalorder %s594_s19, %s690_s0  ;;  %p376_p1 = scmp.lt.u32.totalorder %s374_s3, %s369_s28 }
  0x34   : > { %p372_p5 = pnand %p371_p3, %p370_p0  ;;  %p378_p4 = scmp.lt.u32.totalorder %s369_s28, %s594_s19 }
  0x35   : > { %p377_p2 = por %p376_p1, %p375_p10 }
  0x36   : > { %p373_p7 = pneg %p372_p5 }
  0x37   : > { %p379_p6 = por %p378_p4, %p377_p2 }
  0x39   : > { %p380_p9 = pnand %p379_p6, %p373_p7 }
  0x3b   : > { %383 = shalt.err (!%p380_p9)
}
  0x3c   : > { %s384_s6 = scalar_lea.vmem %s600_s24, 128  ;;  %s472_s14 = smov [#allocation2]  }
  0x3d   : > { %p385_p12 = scmp.ne.s32.totalorder %s600_s24, %s384_s6  ;;  %s389_s18 = sshll.u32 %s472_s14, 4  ;;  %s390_s18 = int_to_ptr.vmem [resolvable:$false] %s389_s18 }
  0x3e   : > { %s391_s21 = scalar_lea.vmem %s390_s18, 256  ;;  %p392_p5 = scmp.lt.s32.totalorder %s600_s24, %s390_s18 }
  0x3f   : > { %p387_p13 = pnand %p385_p12, %p371_p3  ;;  %p393_p10 = scmp.lt.s32.totalorder %s391_s21, %s384_s6 }
  0x41   : > { %p388_p0 = pneg %p387_p13  ;;  %p394_p1 = por %p393_p10, %p392_p5 }
  0x43   : > { %p395_p2 = pnand %p394_p1, %p388_p0 }
  0x45   : > { %398 = shalt.err (!%p395_p2)
}
  0x46   : > { %299 = dma.hbm_to_vmem [thread:$0]  (!%p596_p11), %s594_s19, 128, %s600_s24, %s122_s27  }
  0x47   : > { %p707_p7 = scmp.ne.s32.totalorder %s698_s17, 0 }
  0x48   : > { %s630_s22 = sand.u32 (!%p707_p7), 1, %s461_s10   ;;  %p708_p3 = scmp.ne.s32.totalorder (!%p707_p7), %s696_s15, 0 }
  0x49   : > { %141 = sbr.rel (%p707_p7) target bundleno = 109 (0x6d), region = 28  ;;  %s277_s25 = sshll.u32 (!%p707_p7), %s630_s22, 3 }
  0x4a   : > { %s144_s23 = scalar_lea.sflag (!%p707_p7), [#allocation3], %s630_s22  ;;  %s147_s28 = scalar_lea.vmem (!%p707_p7), [#allocation2], %s277_s25 }
  0x50   : > { %444 = dma.done.wait (%p708_p3), %s144_s23, 128  }
  0x51   : > { %446 = vsyncadd (%p708_p3), %s144_s23, 4294967168  ;;  %p709_p4 = scmp.eq.s32.totalorder %s510_s13, 0 }
  0x53   : > { %448 = dma.done.wait (%p709_p4), [#allocation6], 128   ;;  %p710_p11 = pmov %p709_p4 }
  0x54   : > { %s171_s17 = scalar_lea.vmem [#allocation7], %s277_s25  ;;  %s281_s24 = sshll.u32 %s510_s13, 7  ;;  %v172_v0 = vld [vmem:[%s147_s28] sm:$0xff]  ;;  %v173_v1 = vld [vmem:[#allocation5] sm:$0xff] }
  0x55   : > { %450 = vsyncadd (%p710_p11), [#allocation6], 4294967168  ;;  %s190_s19 = sshll.u32 %s171_s17, 4  ;;  %v174_v2 = vadd.f32 %v173_v1, %v172_v0  ;;  %s648_s27 = scalar_lea.hbm %s692_s2, %s281_s24  ;;  %s643_s19 = int_to_ptr.vmem [resolvable:$true] %s190_s19 }
  0x56   : > { %s177_s29 = scalar_lea.sflag [#allocation4], %s630_s22  ;;  %s399_s30 = scalar_lea.vmem %s643_s19, 128 }
  0x57   : > { %175 = vst [vmem:[%s171_s17] sm:$0xff] %v174_v2  ;;  %p400_p6 = scmp.ne.s32.totalorder %s643_s19, %s399_s30  ;;  %s473_s13 = smov [#allocation7]  }
  0x58   : > { %s403_s3 = sshll.u32 %s473_s13, 4  ;;  %s404_s3 = int_to_ptr.vmem [resolvable:$false] %s403_s3 }
  0x59   : > { %p401_p9 = pnand %p400_p6, %p581_p8  ;;  %s405_s4 = scalar_lea.vmem %s404_s3, 256 }
  0x5a   : > { %p406_p13 = scmp.lt.s32.totalorder %s643_s19, %s404_s3  ;;  %p407_p0 = scmp.lt.s32.totalorder %s405_s4, %s399_s30 }
  0x5b   : > { %p402_p12 = pneg %p401_p9 }
  0x5c   : > { %p408_p5 = por %p407_p0, %p406_p13 }
  0x5e   : > { %p409_p10 = pnand %p408_p5, %p402_p12 }
  0x60   : > { %412 = shalt.err (!%p409_p10)
}
  0x61   : > { %s413_s5 = scalar_lea.hbm %s648_s27, 128  ;;  %s417_s18 = scalar_lea.hbm %s692_s2, 256 }
  0x62   : > { %p414_p1 = scmp.ne.s32.totalorder %s648_s27, %s413_s5  ;;  %p418_p3 = scmp.lt.u32.totalorder %s648_s27, %s692_s2 }
  0x63   : > { %p419_p4 = scmp.lt.u32.totalorder %s417_s18, %s413_s5  ;;  %p421_p6 = scmp.lt.u32.totalorder %s413_s5, %s648_s27 }
  0x64   : > { %p415_p2 = pnand %p414_p1, %p581_p8 }
  0x65   : > { %p420_p11 = por %p419_p4, %p418_p3 }
  0x66   : > { %p416_p7 = pneg %p415_p2 }
  0x67   : > { %p422_p9 = por %p421_p6, %p420_p11 }
  0x69   : > { %p423_p12 = pnand %p422_p9, %p416_p7 }
  0x6b   : > { %426 = shalt.err (!%p423_p12)
}
  0x6c   : > { %290 = dma.vmem_to_hbm [thread:$0]  (%p581_p8), %s643_s19, 128, %s648_s27, %s177_s29  }
  0x6d PF: > { %s202_s25 = sand.u32 1, %s457_s9   ;;  %p711_p13 = scmp.ne.s32.totalorder %s697_s16, 0 }
  0x6e   : > { %p712_p0 = scmp.ge.s32.totalorder %s469_s12, 2  ;;  %s203_s23 = scalar_lea.sflag [#allocation4], %s202_s25 }
  0x70   : > { %p301_p5 = pnand %p712_p0, %p711_p13 }
  0x72   : > { %452 = dma.done.wait (!%p301_p5), %s203_s23, 128  }
  0x73   : > { %454 = vsyncadd (!%p301_p5), %s203_s23, 4294967168  ;;  %p16_p10 = scmp.ge.s32.totalorder %s537_s20, 4   ;;  %s713_s9 = smov %s461_s10 }
  0x74   : > { %s714_s10 = smov %s465_s11  ;;  %s715_s11 = smov %s573_s7 }
  0x75   : > { %s716_s12 = smov %s537_s20  ;;  %18 = sbr.rel (!%p16_p10) target bundleno = 6 (0x6), region = 77 }
  0x7c   :  { %208 = vsyncpa [#allocation3], 1 }
  0x7d   :  { %210 = vsyncpa [#allocation3 + $0x1], 1 }
  0x7e   :  { %211 = vsyncpa [#allocation6], 1 }
  0x7f   :  { %212 = vsyncpa [#allocation4], 1 }
  0x80   :  { %214 = vsyncpa [#allocation4 + $0x1], 1 }

// kernel: tpu_custom_call.1
= control target key start
LH: loop header
LB: loop body
LE: loop exit
PB: predicated region body
PF: predicated region fallthrough
CT: control target
= control target key end

     0   :  { %10 = vsyncpa [#allocation3], 0  ;;  %s1144_s0 = inlined_call_operand.hbm [shape: f32[128,48], index: 0, kind: input, shape index: {}]   ;;  %s1145_s1 = inlined_call_operand.hbm [shape: bf16[48,32], index: 1, kind: input, shape index: {}]   ;;  %s1146_s2 = inlined_call_operand.hbm [shape: f32[1,32], index: 2, kind: input, shape index: {}]   ;;  %s1147_s3 = inlined_call_operand.hbm [shape: f32[1,32], index: 3, kind: input, shape index: {}]   ;;  %s1148_s4 = inlined_call_operand.hbm [shape: f32[1,32], index: 4, kind: input, shape index: {}]   ;;  %s1149_s5 = inlined_call_operand.hbm [shape: f32[128,32], index: 5, kind: output, shape index: {}]  }
   0x1   :  { %11 = vsyncpa [#allocation6], 0 }
   0x2   :  { %12 = vsyncpa [#allocation9], 0 }
   0x3   :  { %13 = vsyncpa [#allocation4], 0  ;;  %s790_s18 = smov [#allocation5]   ;;  %s650_s22 = scalar_lea.hbm %s1145_s1, 384 }
   0x4   :  { %s31_s19 = sshll.u32 %s790_s18, 4  ;;  %p651_p0 = scmp.ne.s32.totalorder %s1145_s1, %s650_s22  ;;  %s32_s19 = int_to_ptr.vmem [resolvable:$true] %s31_s19 }
   0x5   :  { %p654_p1 = scmp.lt.u32.totalorder %s650_s22, %s1145_s1 }
   0x7   :  { %p656_p2 = pnand %p654_p1, %p651_p0 }
   0x9   :  { %659 = shalt.err (!%p656_p2)
}
   0xa   :  { %s660_s27 = scalar_lea.vmem %s32_s19, 384  ;;  %p665_p4 = scmp.lt.s32.totalorder %s32_s19, %s32_s19 }
   0xb   :  { %p661_p3 = scmp.ne.s32.totalorder %s32_s19, %s660_s27  ;;  %p666_p5 = scmp.lt.s32.totalorder %s660_s27, %s660_s27 }
   0xd   :  { %p667_p6 = por %p666_p5, %p665_p4 }
   0xf   :  { %p668_p7 = pnand %p667_p6, %p661_p3 }
  0x11   :  { %671 = shalt.err (!%p668_p7)
}
  0x12   :  { %s791_s28 = smov 64   ;;  %s792_s29 = smov 4  }
  0x13   :  { %37 = dma.hbm_to_vmem [thread:$0]  %s1145_s1, 384, %s32_s19, [#allocation6], %s791_s28, %s791_s28, %s792_s29  }
  0x14   :  { %s793_s7 = smov [#allocation8]   ;;  %s794_s9 = smov [#allocation2]  }
  0x15   :  { %s54_s8 = sshll.u32 %s793_s7, 4  ;;  %s19_s10 = sshll.u32 %s794_s9, 4  ;;  %s55_s8 = int_to_ptr.vmem [resolvable:$true] %s54_s8  ;;  %s20_s10 = int_to_ptr.vmem [resolvable:$true] %s19_s10 }
  0x16   :  { %s672_s13 = scalar_lea.hbm %s1147_s3, 16 }
  0x17   :  { %p673_p8 = scmp.ne.s32.totalorder %s1147_s3, %s672_s13  ;;  %p676_p9 = scmp.lt.u32.totalorder %s672_s13, %s1147_s3 }
  0x19   :  { %p678_p10 = pnand %p676_p9, %p673_p8 }
  0x1b   :  { %681 = shalt.err (!%p678_p10)
}
  0x1c   :  { %s682_s1 = scalar_lea.vmem %s55_s8, 16  ;;  %s686_s18 = scalar_lea.vmem %s55_s8, 32 }
  0x1d   :  { %p683_p11 = scmp.ne.s32.totalorder %s55_s8, %s682_s1  ;;  %p687_p12 = scmp.lt.s32.totalorder %s55_s8, %s55_s8 }
  0x1e   :  { %p688_p13 = scmp.lt.s32.totalorder %s686_s18, %s682_s1 }
  0x20   :  { %p689_p0 = por %p688_p13, %p687_p12 }
  0x22   :  { %p690_p1 = pnand %p689_p0, %p683_p11 }
  0x24   :  { %693 = shalt.err (!%p690_p1)
}
  0x25   :  { %57 = dma.hbm_to_vmem [thread:$0]  %s1147_s3, 16, %s55_s8, [#allocation9]  }
  0x26   :  { %s694_s23 = scalar_lea.hbm %s1144_s0, 2048 }
  0x27   :  { %p695_p2 = scmp.ne.s32.totalorder %s1144_s0, %s694_s23  ;;  %p698_p3 = scmp.lt.u32.totalorder %s694_s23, %s1144_s0 }
  0x29   :  { %p700_p4 = pnand %p698_p3, %p695_p2 }
  0x2b   :  { %703 = shalt.err (!%p700_p4)
}
  0x2c   :  { %s704_s28 = scalar_lea.vmem %s20_s10, 2048  ;;  %p709_p6 = scmp.lt.s32.totalorder %s20_s10, %s20_s10 }
  0x2d   :  { %p705_p5 = scmp.ne.s32.totalorder %s20_s10, %s704_s28  ;;  %p710_p7 = scmp.lt.s32.totalorder %s704_s28, %s704_s28 }
  0x2f   :  { %p711_p8 = por %p710_p7, %p709_p6 }
  0x31   :  { %p712_p9 = pnand %p711_p8, %p705_p5 }
  0x33   :  { %715 = shalt.err (!%p712_p9)
}
  0x34   :  { %s795_s3 = smov 128   ;;  %s796_s29 = smov 8  }
  0x35   :  { %25 = dma.hbm_to_vmem [thread:$0]  %s1144_s0, 2048, %s20_s10, [#allocation3], %s795_s3, %s795_s3, %s796_s29  }
  0x36   :  { %s797_s7 = smov [#allocation7]   ;;  %s798_s9 = smov [#allocation10]  }
  0x37   :  { %s44_s8 = sshll.u32 %s797_s7, 4  ;;  %s64_s11 = sshll.u32 %s798_s9, 4  ;;  %s45_s8 = int_to_ptr.vmem [resolvable:$true] %s44_s8  ;;  %s65_s11 = int_to_ptr.vmem [resolvable:$true] %s64_s11 }
  0x38   :  { %s716_s14 = scalar_lea.hbm %s1146_s2, 16 }
  0x39   :  { %p717_p10 = scmp.ne.s32.totalorder %s1146_s2, %s716_s14  ;;  %p720_p11 = scmp.lt.u32.totalorder %s716_s14, %s1146_s2 }
  0x3b   :  { %p722_p12 = pnand %p720_p11, %p717_p10 }
  0x3d   :  { %725 = shalt.err (!%p722_p12)
}
  0x3e   :  { %s726_s0 = scalar_lea.vmem %s45_s8, 16  ;;  %s730_s10 = scalar_lea.vmem %s45_s8, 32 }
  0x3f   :  { %p727_p13 = scmp.ne.s32.totalorder %s45_s8, %s726_s0  ;;  %p731_p0 = scmp.lt.s32.totalorder %s45_s8, %s45_s8 }
  0x40   :  { %p732_p1 = scmp.lt.s32.totalorder %s730_s10, %s726_s0 }
  0x42   :  { %p733_p2 = por %p732_p1, %p731_p0 }
  0x44   :  { %p734_p3 = pnand %p733_p2, %p727_p13 }
  0x46   :  { %737 = shalt.err (!%p734_p3)
}
  0x47   :  { %47 = dma.hbm_to_vmem [thread:$0]  %s1146_s2, 16, %s45_s8, [#allocation6]  }
  0x48   :  { %s738_s22 = scalar_lea.hbm %s1148_s4, 16 }
  0x49   :  { %p739_p4 = scmp.ne.s32.totalorder %s1148_s4, %s738_s22  ;;  %p742_p5 = scmp.lt.u32.totalorder %s738_s22, %s1148_s4 }
  0x4b   :  { %p744_p6 = pnand %p742_p5, %p739_p4 }
  0x4d   :  { %747 = shalt.err (!%p744_p6)
}
  0x4e   :  { %s748_s27 = scalar_lea.vmem %s65_s11, 16  ;;  %s752_s28 = scalar_lea.vmem %s65_s11, 32 }
  0x4f   :  { %p749_p7 = scmp.ne.s32.totalorder %s65_s11, %s748_s27  ;;  %p753_p8 = scmp.lt.s32.totalorder %s65_s11, %s65_s11 }
  0x50   :  { %p754_p9 = scmp.lt.s32.totalorder %s752_s28, %s748_s27 }
  0x52   :  { %p755_p10 = por %p754_p9, %p753_p8 }
  0x54   :  { %p756_p11 = pnand %p755_p10, %p749_p7 }
  0x56   :  { %759 = shalt.err (!%p756_p11)
}
  0x57   :  { %67 = dma.hbm_to_vmem [thread:$0]  %s1148_s4, 16, %s65_s11, [#allocation9]  }
  0x58   :  { %782 = dma.done.wait [#allocation3], 2048  }
  0x59   :  { %783 = vsyncadd [#allocation3], 4294965248 }
  0x5a   :  { %784 = dma.done.wait [#allocation6], 400  }
  0x5b   :  { %785 = vsyncadd [#allocation6], 4294966896 }
  0x5c   :  { %786 = dma.done.wait [#allocation9], 32  }
  0x5d   :  { %787 = vsyncadd [#allocation9], 4294967264  ;;  %v615_v0 = vld [vmem:[#allocation5] sm:$0xff]   ;;  %v616_v1 = vld [vmem:[#allocation5 + $0x8] sm:$0xff]   ;;  %vm139_vm0 = vcmask 392192   ;;  %vm263_vm1 = vcmask 261120  }
  0x5e   :  { %577 = vmatprep.subr.bf16.mxu0 %v615_v0  ;;  %599 = vmatprep.subr.bf16.mxu1 %v615_v0  ;;  %v84_v2 = vld [vmem:[#allocation2] sm:$0xff]  ;;  %v85_v3 = vld [vmem:[#allocation2 + $0x8] sm:$0xff]  ;;  %v617_v5 = vld [vmem:[#allocation5 + $0x10] sm:$0xff]   ;;  %s799_s4 = smov [#allocation11]  }
  0x5f   :  { %578 = vmatpush3.bf16.msra.mxu0 %v615_v0  ;;  %602 = vmatpush3.bf16.msra.mxu1 %v615_v0  ;;  %v92_v4 = vld [vmem:[#allocation2 + $0x40] sm:$0xff]  ;;  %v100_v6 = vpack.c.bf16 %v85_v3, %v84_v2  ;;  %v93_v7 = vld [vmem:[#allocation2 + $0x48] sm:$0xff]  ;;  %v86_v9 = vld [vmem:[#allocation2 + $0x10] sm:$0xff]  ;;  %s538_s6 = sshll.u32 %s799_s4, 4  ;;  %s539_s6 = int_to_ptr.vmem [resolvable:$true] %s538_s6 }
  0x60   :  { %579 = vmatprep.subr.bf16.mxu0 %v616_v1  ;;  %600 = vmatprep.subr.bf16.mxu1 %v616_v1  ;;  %v104_v8 = vpack.c.bf16 %v93_v7, %v92_v4  ;;  %v87_v10 = vld [vmem:[#allocation2 + $0x18] sm:$0xff]  ;;  %v94_v11 = vld [vmem:[#allocation2 + $0x50] sm:$0xff]  ;;  %v88_v13 = vld [vmem:[#allocation2 + $0x20] sm:$0xff]  ;;  %s760_s7 = scalar_lea.vmem %s539_s6, 2048  ;;  %p765_p13 = scmp.lt.s32.totalorder %s539_s6, %s539_s6 }
  0x61   :  { %583 = vmatprep.mubr.msk.bf16.mxu0 %vm139_vm0, %v100_v6  ;;  %v95_v12 = vld [vmem:[#allocation2 + $0x58] sm:$0xff]  ;;  %v89_v14 = vld [vmem:[#allocation2 + $0x28] sm:$0xff]  ;;  %v96_v15 = vld [vmem:[#allocation2 + $0x60] sm:$0xff]  ;;  %v101_v17 = vpack.c.bf16 %v87_v10, %v86_v9  ;;  %p761_p12 = scmp.ne.s32.totalorder %s539_s6, %s760_s7  ;;  %p766_p0 = scmp.lt.s32.totalorder %s760_s7, %s760_s7 }
  0x62   :  { %v97_v16 = vld [vmem:[#allocation2 + $0x68] sm:$0xff]  ;;  %591 = vmatprep.mubr.msk.bf16.mxu1 %vm139_vm0, %v104_v8  ;;  %v105_v18 = vpack.c.bf16 %v95_v12, %v94_v11  ;;  %v102_v19 = vpack.c.bf16 %v89_v14, %v88_v13  ;;  %v90_v21 = vld [vmem:[#allocation2 + $0x30] sm:$0xff]  ;;  %v91_v22 = vld [vmem:[#allocation2 + $0x38] sm:$0xff] }
  0x63   :  { %580 = vmatpush3.bf16.msra.mxu0 %v616_v1  ;;  %603 = vmatpush3.bf16.msra.mxu1 %v616_v1  ;;  %v106_v20 = vpack.c.bf16 %v97_v16, %v96_v15  ;;  %v98_v23 = vld [vmem:[#allocation2 + $0x70] sm:$0xff]  ;;  %v99_v24 = vld [vmem:[#allocation2 + $0x78] sm:$0xff]  ;;  %v103_v25 = vpack.c.bf16 %v91_v22, %v90_v21  ;;  %p767_p1 = por %p766_p0, %p765_p13 }
  0x64   :  { %581 = vmatprep.subr.bf16.mxu0 %v617_v5  ;;  %601 = vmatprep.subr.bf16.mxu1 %v617_v5  ;;  %v107_v26 = vpack.c.bf16 %v99_v24, %v98_v23  ;;  %v552_v27 = vld [vmem:[#allocation7] ss:$0 sm:$0xff] }
  0x65   :  { %p768_p2 = pnand %p767_p1, %p761_p12 }
  0x67   :  { %582 = vmatpush3.bf16.msra.mxu0 %v617_v5  ;;  %604 = vmatpush3.bf16.msra.mxu1 %v617_v5 }
  0x6a   :  { %584 = vmatmul.mubr.msk.bf16.vlgmr.msra.gmra.mrb[0].mxu0 %vm139_vm0, %v101_v17  ;;  %592 = vmatmul.mubr.msk.bf16.vlgmr.msra.gmra.mrb[0].mxu1 %vm139_vm0, %v105_v18 }
  0x6b   :  { %587 = vmatprep.mubr.msk.bf16.mxu0 %vm139_vm0, %v102_v19  ;;  %595 = vmatprep.mubr.msk.bf16.mxu1 %vm139_vm0, %v106_v20 }
  0x72   :  { %588 = vmatmul.mubr.msk.bf16.gmra.mrb[4].mxu0 %vm139_vm0, %v103_v25  ;;  %596 = vmatmul.mubr.msk.bf16.gmra.mrb[4].mxu1 %vm139_vm0, %v107_v26 }
 0x13d   :  { %v585_v28 = vpop.f32.mrb[0].mxu0  ;;  %v593_v29 = vpop.f32.mrb[0].mxu1 }
 0x13e   :  { %v901_v30 = vadd.f32 %v585_v28, %v552_v27  ;;  %v903_v31 = vadd.f32 %v593_v29, %v552_v27  ;;  %v198_v32 = vpop.f32.mrb[1].mxu0  ;;  %v230_v33 = vpop.f32.mrb[1].mxu1 }
 0x13f   :  { %v586_v34 = vpop.f32.mrb[2].mxu0  ;;  %v594_v35 = vpop.f32.mrb[2].mxu1  ;;  %v905_v36 = vadd.f32 %v552_v27, %v198_v32  ;;  %v913_v42 = vadd.f32 %v552_v27, %v230_v33 }
 0x140   :  { %v907_v37 = vadd.f32 %v586_v34, %v552_v27  ;;  %v201_v38 = vpop.f32.mrb[3].mxu0  ;;  %v233_v39 = vpop.f32.mrb[3].mxu1  ;;  %v294_v40 = vsel %vm263_vm1, %v903_v31, 0.0  ;;  %v270_v41 = vsel %vm263_vm1, %v901_v30, 0.0  ;;  %v915_v43 = vadd.f32 %v594_v35, %v552_v27 }
 0x141   :  { %295 = vadd.xlane.f32.xlu0 %v294_v40  ;;  %271 = vadd.xlane.f32.xlu1 %v270_v41  ;;  %v264_v45 = vsel %vm263_vm1, %v905_v36, 0.0  ;;  %v921_v52 = vadd.f32 %v552_v27, %v201_v38  ;;  %v923_v53 = vadd.f32 %v552_v27, %v233_v39  ;;  %v288_v55 = vsel %vm263_vm1, %v913_v42, 0.0 }
 0x142   :  { %v273_v44 = vsel %vm263_vm1, %v907_v37, 0.0  ;;  %v297_v54 = vsel %vm263_vm1, %v915_v43, 0.0 }
 0x143   :  { %v291_v60 = vsel %vm263_vm1, %v923_v53, 0.0  ;;  %v267_v61 = vsel %vm263_vm1, %v921_v52, 0.0 }
 0x145   :  { %274 = vadd.xlane.f32.xlu1 %v273_v44  ;;  %265 = vadd.xlane.f32.xlu0 %v264_v45  ;;  %v589_v46 = vpop.f32.mrb[4].mxu0  ;;  %v597_v47 = vpop.f32.mrb[4].mxu1 }
 0x146   :  { %v214_v48 = vpop.f32.mrb[5].mxu0  ;;  %v246_v49 = vpop.f32.mrb[5].mxu1  ;;  %v929_v58 = vadd.f32 %v589_v46, %v552_v27  ;;  %v957_v8 = vadd.f32 %v597_v47, %v552_v27 }
 0x147   :  { %v590_v50 = vpop.f32.mrb[6].mxu0  ;;  %v598_v51 = vpop.f32.mrb[6].mxu1  ;;  %v941_v0 = vadd.f32 %v552_v27, %v214_v48  ;;  %v945_v2 = vadd.f32 %v552_v27, %v246_v49 }
 0x148   :  { %v217_v56 = vpop.f32.mrb[7].mxu0  ;;  %v249_v57 = vpop.f32.mrb[7].mxu1  ;;  %v931_v59 = vadd.f32 %v590_v50, %v552_v27  ;;  %v282_v63 = vsel %vm263_vm1, %v929_v58, 0.0  ;;  %v959_v9 = vadd.f32 %v598_v51, %v552_v27  ;;  %v306_v11 = vsel %vm263_vm1, %v957_v8, 0.0 }
 0x149   :  { %298 = vadd.xlane.f32.xlu1 %v297_v54  ;;  %289 = vadd.xlane.f32.xlu0 %v288_v55  ;;  %v943_v1 = vadd.f32 %v552_v27, %v217_v56  ;;  %v947_v3 = vadd.f32 %v552_v27, %v249_v57  ;;  %v276_v5 = vsel %vm263_vm1, %v941_v0, 0.0  ;;  %v300_v7 = vsel %vm263_vm1, %v945_v2, 0.0 }
 0x14a   :  { %v285_v62 = vsel %vm263_vm1, %v931_v59, 0.0  ;;  %v309_v10 = vsel %vm263_vm1, %v959_v9, 0.0 }
 0x14b   :  { %v279_v4 = vsel %vm263_vm1, %v943_v1, 0.0  ;;  %v303_v6 = vsel %vm263_vm1, %v947_v3, 0.0 }
 0x14d   :  { %292 = vadd.xlane.f32.xlu1 %v291_v60  ;;  %268 = vadd.xlane.f32.xlu0 %v267_v61 }
 0x151   :  { %286 = vadd.xlane.f32.xlu1 %v285_v62  ;;  %283 = vadd.xlane.f32.xlu0 %v282_v63 }
 0x155   :  { %280 = vadd.xlane.f32.xlu1 %v279_v4  ;;  %277 = vadd.xlane.f32.xlu0 %v276_v5 }
 0x159   :  { %304 = vadd.xlane.f32.xlu1 %v303_v6  ;;  %301 = vadd.xlane.f32.xlu0 %v300_v7 }
 0x15d   :  { %310 = vadd.xlane.f32.xlu1 %v309_v10  ;;  %307 = vadd.xlane.f32.xlu0 %v306_v11 }
 0x1ce   :  { %v296_v12 = vpop.xlane.xlu0 %295  ;;  %v272_v13 = vpop.xlane.xlu1 %271 }
 0x1cf   :  { %v323_v14 = vmul.f32 0.03125, %v296_v12  ;;  %v315_v15 = vmul.f32 0.03125, %v272_v13 }
 0x1d1   :  { %v966_v16 = vsub.f32 %v903_v31, %v323_v14  ;;  %v969_v17 = vsub.f32 %v901_v30, %v315_v15 }
 0x1d2   :  { %v275_v18 = vpop.xlane.xlu1 %274  ;;  %v266_v19 = vpop.xlane.xlu0 %265 }
 0x1d3   :  { %v316_v20 = vmul.f32 0.03125, %v275_v18  ;;  %v313_v21 = vmul.f32 0.03125, %v266_v19  ;;  %v347_v22 = vmul.f32 %v969_v17, %v969_v17  ;;  %v355_v26 = vmul.f32 %v966_v16, %v966_v16 }
 0x1d5   :  { %v974_v23 = vsub.f32 %v907_v37, %v316_v20  ;;  %v977_v24 = vsub.f32 %v905_v36, %v313_v21  ;;  %v367_v25 = vsel %vm263_vm1, %v347_v22, 0.0  ;;  %v391_v36 = vsel %vm263_vm1, %v355_v26, 0.0 }
 0x1d6   :  { %v299_v27 = vpop.xlane.xlu1 %298  ;;  %368 = vadd.xlane.f32.xlu0 %v367_v25  ;;  %v290_v28 = vpop.xlane.xlu0 %289 }
 0x1d7   :  { %v324_v29 = vmul.f32 0.03125, %v299_v27  ;;  %v321_v30 = vmul.f32 0.03125, %v290_v28  ;;  %v348_v31 = vmul.f32 %v974_v23, %v974_v23  ;;  %v345_v32 = vmul.f32 %v977_v24, %v977_v24 }
 0x1d9   :  { %v987_v33 = vsub.f32 %v915_v43, %v324_v29  ;;  %v990_v34 = vsub.f32 %v913_v42, %v321_v30  ;;  %v370_v35 = vsel %vm263_vm1, %v348_v31, 0.0  ;;  %v361_v44 = vsel %vm263_vm1, %v345_v32, 0.0 }
 0x1da   :  { %v293_v37 = vpop.xlane.xlu1 %292  ;;  %371 = vadd.xlane.f32.xlu1 %v370_v35  ;;  %392 = vadd.xlane.f32.xlu0 %v391_v36  ;;  %v269_v38 = vpop.xlane.xlu0 %268 }
 0x1db   :  { %v322_v39 = vmul.f32 0.03125, %v293_v37  ;;  %v314_v40 = vmul.f32 0.03125, %v269_v38  ;;  %v356_v41 = vmul.f32 %v987_v33, %v987_v33  ;;  %v353_v46 = vmul.f32 %v990_v34, %v990_v34 }
 0x1dd   :  { %v998_v43 = vsub.f32 %v923_v53, %v322_v39  ;;  %v1001_v42 = vsub.f32 %v921_v52, %v314_v40  ;;  %v394_v45 = vsel %vm263_vm1, %v356_v41, 0.0  ;;  %v385_v55 = vsel %vm263_vm1, %v353_v46, 0.0 }
 0x1de   :  { %v287_v47 = vpop.xlane.xlu1 %286  ;;  %395 = vadd.xlane.f32.xlu1 %v394_v45  ;;  %362 = vadd.xlane.f32.xlu0 %v361_v44  ;;  %v284_v48 = vpop.xlane.xlu0 %283 }
 0x1df   :  { %v320_v49 = vmul.f32 0.03125, %v287_v47  ;;  %v319_v50 = vmul.f32 0.03125, %v284_v48  ;;  %v346_v51 = vmul.f32 %v1001_v42, %v1001_v42  ;;  %v354_v53 = vmul.f32 %v998_v43, %v998_v43 }
 0x1e1   :  { %v1011_v52 = vsub.f32 %v931_v59, %v320_v49  ;;  %v1014_v54 = vsub.f32 %v929_v58, %v319_v50  ;;  %v364_v56 = vsel %vm263_vm1, %v346_v51, 0.0  ;;  %v388_v4 = vsel %vm263_vm1, %v354_v53, 0.0 }
 0x1e2   :  { %v281_v57 = vpop.xlane.xlu1 %280  ;;  %386 = vadd.xlane.f32.xlu0 %v385_v55  ;;  %365 = vadd.xlane.f32.xlu1 %v364_v56  ;;  %v278_v60 = vpop.xlane.xlu0 %277 }
 0x1e3   :  { %v318_v61 = vmul.f32 0.03125, %v281_v57  ;;  %v317_v62 = vmul.f32 0.03125, %v278_v60  ;;  %v351_v63 = vmul.f32 %v1014_v54, %v1014_v54  ;;  %v352_v6 = vmul.f32 %v1011_v52, %v1011_v52  ;;  %v1061_v60 = vld [vmem:[#allocation8] ss:$0 sm:$0xff] }
 0x1e5   :  { %v1022_v59 = vsub.f32 %v943_v1, %v318_v61  ;;  %v1025_v58 = vsub.f32 %v941_v0, %v317_v62  ;;  %v379_v5 = vsel %vm263_vm1, %v351_v63, 0.0  ;;  %v382_v15 = vsel %vm263_vm1, %v352_v6, 0.0  ;;  %v1064_v6 = vld [vmem:[#allocation10] ss:$0 sm:$0xff] }
 0x1e6   :  { %v305_v7 = vpop.xlane.xlu1 %304  ;;  %389 = vadd.xlane.f32.xlu1 %v388_v4  ;;  %380 = vadd.xlane.f32.xlu0 %v379_v5  ;;  %v302_v10 = vpop.xlane.xlu0 %301 }
 0x1e7   :  { %v326_v11 = vmul.f32 0.03125, %v305_v7  ;;  %v325_v12 = vmul.f32 0.03125, %v302_v10  ;;  %v349_v13 = vmul.f32 %v1025_v58, %v1025_v58  ;;  %v350_v1 = vmul.f32 %v1022_v59, %v1022_v59 }
 0x1e9   :  { %v1035_v0 = vsub.f32 %v947_v3, %v326_v11  ;;  %v1038_v14 = vsub.f32 %v945_v2, %v325_v12  ;;  %v373_v18 = vsel %vm263_vm1, %v349_v13, 0.0  ;;  %v376_v26 = vsel %vm263_vm1, %v350_v1, 0.0 }
 0x1ea   :  { %v311_v19 = vpop.xlane.xlu1 %310  ;;  %383 = vadd.xlane.f32.xlu1 %v382_v15  ;;  %374 = vadd.xlane.f32.xlu0 %v373_v18  ;;  %v308_v20 = vpop.xlane.xlu0 %307 }
 0x1eb   :  { %v328_v21 = vmul.f32 0.03125, %v311_v19  ;;  %v327_v22 = vmul.f32 0.03125, %v308_v20  ;;  %v357_v25 = vmul.f32 %v1038_v14, %v1038_v14  ;;  %v358_v28 = vmul.f32 %v1035_v0, %v1035_v0 }
 0x1ed   :  { %v1046_v3 = vsub.f32 %v959_v9, %v328_v21  ;;  %v1049_v2 = vsub.f32 %v957_v8, %v327_v22  ;;  %v397_v27 = vsel %vm263_vm1, %v357_v25, 0.0  ;;  %v400_v30 = vsel %vm263_vm1, %v358_v28, 0.0 }
 0x1ee   :  { %377 = vadd.xlane.f32.xlu1 %v376_v26  ;;  %398 = vadd.xlane.f32.xlu0 %v397_v27 }
 0x1ef   :  { %v359_v29 = vmul.f32 %v1049_v2, %v1049_v2  ;;  %v360_v9 = vmul.f32 %v1046_v3, %v1046_v3 }
 0x1f1   :  { %v403_v31 = vsel %vm263_vm1, %v359_v29, 0.0  ;;  %v406_v8 = vsel %vm263_vm1, %v360_v9, 0.0 }
 0x1f2   :  { %401 = vadd.xlane.f32.xlu1 %v400_v30  ;;  %404 = vadd.xlane.f32.xlu0 %v403_v31 }
 0x1f6   :  { %407 = vadd.xlane.f32.xlu1 %v406_v8 }
 0x263   :  { %v369_v32 = vpop.xlane.xlu0 %368 }
 0x264   :  { %v411_v35 = vmul.f32 0.03125, %v369_v32 }
 0x266   :  { %v427_v36 = vadd.f32 1e-05, %v411_v35 }
 0x267   :  { %v372_v37 = vpop.xlane.xlu1 %371  ;;  %v393_v38 = vpop.xlane.xlu0 %392 }
 0x268   :  { %618 = vrsqrt.f32 %v427_v36  ;;  %v412_v39 = vmul.f32 0.03125, %v372_v37  ;;  %v419_v40 = vmul.f32 0.03125, %v393_v38 }
 0x26a   :  { %v428_v41 = vadd.f32 1e-05, %v412_v39  ;;  %v435_v44 = vadd.f32 1e-05, %v419_v40 }
 0x26b   :  { %v396_v45 = vpop.xlane.xlu1 %395  ;;  %v363_v46 = vpop.xlane.xlu0 %362 }
 0x26c   :  { %620 = vrsqrt.f32 %v428_v41  ;;  %v420_v47 = vmul.f32 0.03125, %v396_v45  ;;  %v409_v48 = vmul.f32 0.03125, %v363_v46 }
 0x26d   :  { %622 = vrsqrt.f32 %v435_v44 }
 0x26e   :  { %v436_v49 = vadd.f32 1e-05, %v420_v47  ;;  %v425_v50 = vadd.f32 1e-05, %v409_v48 }
 0x26f   :  { %v366_v51 = vpop.xlane.xlu1 %365  ;;  %v387_v53 = vpop.xlane.xlu0 %386 }
 0x270   :  { %624 = vrsqrt.f32 %v436_v49  ;;  %v410_v55 = vmul.f32 0.03125, %v366_v51  ;;  %v417_v56 = vmul.f32 0.03125, %v387_v53 }
 0x271   :  { %626 = vrsqrt.f32 %v425_v50 }
 0x272   :  { %v619_v57 = vpop.eup %618  ;;  %v426_v61 = vadd.f32 1e-05, %v410_v55  ;;  %v433_v62 = vadd.f32 1e-05, %v417_v56 }
 0x273   :  { %v459_v63 = vmul.f32 %v619_v57, %v969_v17  ;;  %v390_v4 = vpop.xlane.xlu1 %389  ;;  %v381_v5 = vpop.xlane.xlu0 %380 }
 0x274   :  { %628 = vrsqrt.f32 %v426_v61  ;;  %v418_v7 = vmul.f32 0.03125, %v390_v4  ;;  %v415_v10 = vmul.f32 0.03125, %v381_v5 }
 0x275   :  { %v481_v11 = vmul.f32 %v1061_v60, %v459_v63  ;;  %630 = vrsqrt.f32 %v433_v62 }
 0x276   :  { %v621_v12 = vpop.eup %620  ;;  %v434_v13 = vadd.f32 1e-05, %v418_v7  ;;  %v431_v1 = vadd.f32 1e-05, %v415_v10 }
 0x277   :  { %v623_v15 = vpop.eup %622  ;;  %v503_v18 = vadd.f32 %v1064_v6, %v481_v11  ;;  %v460_v19 = vmul.f32 %v621_v12, %v974_v23  ;;  %v384_v20 = vpop.xlane.xlu1 %383 }
 0x278   :  { %v375_v17 = vpop.xlane.xlu0 %374  ;;  %v467_v21 = vmul.f32 %v623_v15, %v966_v16  ;;  %632 = vrsqrt.f32 %v434_v13  ;;  %v416_v22 = vmul.f32 0.03125, %v384_v20 }
 0x279   :  { %v413_v25 = vmul.f32 0.03125, %v375_v17  ;;  %519 = vst.msk [vmem:[#allocation11 + $0x10] sm:$0xff] %vm263_vm1, %v503_v18  ;;  %v482_v26 = vmul.f32 %v1061_v60, %v460_v19  ;;  %634 = vrsqrt.f32 %v431_v1 }
 0x27a   :  { %v625_v27 = vpop.eup %624  ;;  %v489_v28 = vmul.f32 %v1061_v60, %v467_v21  ;;  %v432_v29 = vadd.f32 1e-05, %v416_v22 }
 0x27b   :  { %v429_v30 = vadd.f32 1e-05, %v413_v25  ;;  %v627_v31 = vpop.eup %626  ;;  %v504_v23 = vadd.f32 %v1064_v6, %v482_v26  ;;  %v468_v9 = vmul.f32 %v625_v27, %v987_v33  ;;  %v378_v8 = vpop.xlane.xlu1 %377 }
 0x27c   :  { %v399_v16 = vpop.xlane.xlu0 %398  ;;  %v511_v32 = vadd.f32 %v1064_v6, %v489_v28  ;;  %v457_v35 = vmul.f32 %v627_v31, %v977_v24  ;;  %636 = vrsqrt.f32 %v432_v29  ;;  %v414_v36 = vmul.f32 0.03125, %v378_v8 }
 0x27d   :  { %520 = vst.msk [vmem:[#allocation11 + $0x18] sm:$0xff] %vm263_vm1, %v504_v23  ;;  %v490_v37 = vmul.f32 %v1061_v60, %v468_v9  ;;  %638 = vrsqrt.f32 %v429_v30  ;;  %v421_v38 = vmul.f32 0.03125, %v399_v16 }
 0x27e   :  { %v629_v39 = vpop.eup %628  ;;  %527 = vst.msk [vmem:[#allocation11 + $0x50] sm:$0xff] %vm263_vm1, %v511_v32  ;;  %v479_v40 = vmul.f32 %v1061_v60, %v457_v35  ;;  %v430_v33 = vadd.f32 1e-05, %v414_v36 }
 0x27f   :  { %v631_v41 = vpop.eup %630  ;;  %v512_v44 = vadd.f32 %v1064_v6, %v490_v37  ;;  %v458_v45 = vmul.f32 %v629_v39, %v1001_v42  ;;  %v437_v24 = vadd.f32 1e-05, %v421_v38  ;;  %v402_v46 = vpop.xlane.xlu1 %401 }
 0x280   :  { %v405_v47 = vpop.xlane.xlu0 %404  ;;  %v501_v48 = vadd.f32 %v1064_v6, %v479_v40  ;;  %v465_v49 = vmul.f32 %v631_v41, %v990_v34  ;;  %640 = vrsqrt.f32 %v430_v33  ;;  %v422_v50 = vmul.f32 0.03125, %v402_v46 }
 0x281   :  { %528 = vst.msk [vmem:[#allocation11 + $0x58] sm:$0xff] %vm263_vm1, %v512_v44  ;;  %v480_v51 = vmul.f32 %v1061_v60, %v458_v45  ;;  %642 = vrsqrt.f32 %v437_v24  ;;  %v423_v53 = vmul.f32 0.03125, %v405_v47 }
 0x282   :  { %v633_v55 = vpop.eup %632  ;;  %517 = vst.msk [vmem:[#allocation11] sm:$0xff] %vm263_vm1, %v501_v48  ;;  %v487_v42 = vmul.f32 %v1061_v60, %v465_v49  ;;  %v438_v56 = vadd.f32 1e-05, %v422_v50 }
 0x283   :  { %v635_v57 = vpop.eup %634  ;;  %v502_v61 = vadd.f32 %v1064_v6, %v480_v51  ;;  %v466_v62 = vmul.f32 %v633_v55, %v998_v43  ;;  %v439_v34 = vadd.f32 1e-05, %v423_v53  ;;  %v408_v63 = vpop.xlane.xlu1 %407 }
 0x284   :  { %v509_v4 = vadd.f32 %v1064_v6, %v487_v42  ;;  %v463_v5 = vmul.f32 %v635_v57, %v1014_v54  ;;  %644 = vrsqrt.f32 %v438_v56  ;;  %v424_v7 = vmul.f32 0.03125, %v408_v63 }
 0x285   :  { %518 = vst.msk [vmem:[#allocation11 + $0x8] sm:$0xff] %vm263_vm1, %v502_v61  ;;  %v488_v10 = vmul.f32 %v1061_v60, %v466_v62  ;;  %646 = vrsqrt.f32 %v439_v34 }
 0x286   :  { %v637_v11 = vpop.eup %636  ;;  %525 = vst.msk [vmem:[#allocation11 + $0x40] sm:$0xff] %vm263_vm1, %v509_v4  ;;  %v485_v12 = vmul.f32 %v1061_v60, %v463_v5  ;;  %v440_v13 = vadd.f32 1e-05, %v424_v7 }
 0x287   :  { %v639_v43 = vpop.eup %638  ;;  %v510_v1 = vadd.f32 %v1064_v6, %v488_v10  ;;  %v464_v15 = vmul.f32 %v637_v11, %v1011_v52 }
 0x288   :  { %v507_v54 = vadd.f32 %v1064_v6, %v485_v12  ;;  %v461_v18 = vmul.f32 %v639_v43, %v1025_v58  ;;  %648 = vrsqrt.f32 %v440_v13 }
 0x289   :  { %526 = vst.msk [vmem:[#allocation11 + $0x48] sm:$0xff] %vm263_vm1, %v510_v1  ;;  %v486_v19 = vmul.f32 %v1061_v60, %v464_v15 }
 0x28a   :  { %v641_v20 = vpop.eup %640  ;;  %523 = vst.msk [vmem:[#allocation11 + $0x30] sm:$0xff] %vm263_vm1, %v507_v54  ;;  %v483_v17 = vmul.f32 %v1061_v60, %v461_v18 }
 0x28b   :  { %v643_v21 = vpop.eup %642  ;;  %v508_v22 = vadd.f32 %v1064_v6, %v486_v19  ;;  %v462_v25 = vmul.f32 %v641_v20, %v1022_v59 }
 0x28c   :  { %v505_v52 = vadd.f32 %v1064_v6, %v483_v17  ;;  %v469_v26 = vmul.f32 %v643_v21, %v1038_v14 }
 0x28d   :  { %524 = vst.msk [vmem:[#allocation11 + $0x38] sm:$0xff] %vm263_vm1, %v508_v22  ;;  %v484_v58 = vmul.f32 %v1061_v60, %v462_v25 }
 0x28e   :  { %v645_v27 = vpop.eup %644  ;;  %521 = vst.msk [vmem:[#allocation11 + $0x20] sm:$0xff] %vm263_vm1, %v505_v52  ;;  %v491_v28 = vmul.f32 %v1061_v60, %v469_v26 }
 0x28f   :  { %v647_v29 = vpop.eup %646  ;;  %v506_v30 = vadd.f32 %v1064_v6, %v484_v58  ;;  %v470_v31 = vmul.f32 %v645_v27, %v1035_v0 }
 0x290   :  { %v513_v59 = vadd.f32 %v1064_v6, %v491_v28  ;;  %v471_v23 = vmul.f32 %v647_v29, %v1049_v2 }
 0x291   :  { %522 = vst.msk [vmem:[#allocation11 + $0x28] sm:$0xff] %vm263_vm1, %v506_v30  ;;  %v492_v14 = vmul.f32 %v1061_v60, %v470_v31 }
 0x292   :  { %v649_v9 = vpop.eup %648  ;;  %529 = vst.msk [vmem:[#allocation11 + $0x60] sm:$0xff] %vm263_vm1, %v513_v59  ;;  %v493_v8 = vmul.f32 %v1061_v60, %v471_v23 }
 0x293   :  { %v514_v16 = vadd.f32 %v1064_v6, %v492_v14  ;;  %v472_v32 = vmul.f32 %v649_v9, %v1046_v3 }
 0x294   :  { %v515_v35 = vadd.f32 %v1064_v6, %v493_v8 }
 0x295   :  { %530 = vst.msk [vmem:[#allocation11 + $0x68] sm:$0xff] %vm263_vm1, %v514_v16  ;;  %v494_v0 = vmul.f32 %v1061_v60, %v472_v32 }
 0x296   :  { %531 = vst.msk [vmem:[#allocation11 + $0x70] sm:$0xff] %vm263_vm1, %v515_v35 }
 0x297   :  { %v516_v2 = vadd.f32 %v1064_v6, %v494_v0 }
 0x299   :  { %532 = vst.msk [vmem:[#allocation11 + $0x78] sm:$0xff] %vm263_vm1, %v516_v2 }
 0x29a   :  { %771 = shalt.err (!%p768_p2)
}
 0x29b   :  { %s772_s11 = scalar_lea.hbm %s1149_s5, 2048 }
 0x29c   :  { %p773_p3 = scmp.ne.s32.totalorder %s1149_s5, %s772_s11  ;;  %p776_p4 = scmp.lt.u32.totalorder %s772_s11, %s1149_s5 }
 0x29e   :  { %p778_p5 = pnand %p776_p4, %p773_p3 }
 0x2a0   :  { %781 = shalt.err (!%p778_p5)
}
 0x2a1   :  { %544 = dma.vmem_to_hbm [thread:$0]  %s539_s6, 2048, %s1149_s5, [#allocation4], %s795_s3, %s795_s3, %s796_s29  }
 0x2a2   :  { %788 = dma.done.wait [#allocation4], 2048  }
 0x2a3   :  { %789 = vsyncadd [#allocation4], 4294965248 }
 0x2a4   :  { %548 = vsyncpa [#allocation3], 1 }
 0x2a5   :  { %549 = vsyncpa [#allocation6], 1 }
 0x2a6   :  { %550 = vsyncpa [#allocation9], 1 }
 0x2a7   :  { %551 = vsyncpa [#allocation4], 1 }

</bundles_post_ra>
